<compile_context>
chip_gen: v6e
topology: v6e:2x2x1
jax: 0.10.0
libtpu: 0.0.40
codegen_flags: <defaults>
</compile_context>

<pallas_src>
import jax
import jax.numpy as jnp
from jax.experimental import pallas as pl
from jax.experimental.pallas import tpu as pltpu


def sinmlp_kernel(xu_ref, xi_ref,
                  w1u_ref, w1i_ref, b1_ref,
                  w2_ref, b2_ref,
                  w3_ref, b3_ref,
                  o_ref):
    # Layer 1 (BN0 + Linear(2D->H) + BN1 folded): split-K matmul, no concat needed.
    h = (jnp.dot(xu_ref[...], w1u_ref[...], preferred_element_type=jnp.float32)
         + jnp.dot(xi_ref[...], w1i_ref[...], preferred_element_type=jnp.float32)
         + b1_ref[...])
    h = jnp.where(h > 0, h, 0.01 * h)          # LeakyReLU(0.01); Dropout = identity (eval)

    # Layer 2 (Linear(H->H) + BN2 folded).
    h = jnp.dot(h.astype(w2_ref.dtype), w2_ref[...],
                preferred_element_type=jnp.float32) + b2_ref[...]
    h = jnp.where(h > 0, h, 0.01 * h)

    # Final Linear(H->1): an N=1 matmul wastes the MXU -> VPU multiply + lane reduce.
    o_ref[...] = jnp.sum(h * w3_ref[...], axis=-1, keepdims=True) + b3_ref[0]


def sinmlp_forward(ids, X, folded, *, max_rows_per_tile=1024):
    """ids: [B, 2] int32, X: [N, 1, D] f32, folded: output of fold_params().

    Returns [B, 1] f32."""
    w1u, w1i, b1, w2, b2, w3_row, b3 = folded
    D = X.shape[-1]
    H = w2.shape[1]

    # ---- glue: embedding gather; bf16 halves the HBM activation stream ----
    X_u = X[ids[:, 0], 0, :].astype(jnp.bfloat16)        # [B, D]
    X_i = X[ids[:, 1], 0, :].astype(jnp.bfloat16)        # [B, D]
    B = X_u.shape[0]

    # Batch tile: multiple of 8 sublanes; pad B up to a whole number of tiles.
    if B >= max_rows_per_tile:
        TB = max_rows_per_tile
    else:
        TB = max(8, -(-B // 8) * 8)
    B_pad = -(-B // TB) * TB
    if B_pad != B:
        pad = ((0, B_pad - B), (0, 0))
        X_u = jnp.pad(X_u, pad)
        X_i = jnp.pad(X_i, pad)

    row_spec = pl.BlockSpec((TB, D), lambda i: (i, 0))
    const = lambda shape: pl.BlockSpec(shape, lambda i: (0, 0))   # VMEM-resident operand

    out = pl.pallas_call(
        sinmlp_kernel,
        grid=(B_pad // TB,),
        out_shape=jax.ShapeDtypeStruct((B_pad, 1), jnp.float32),
        in_specs=[
            row_spec,                          # X_u tile            [TB, D]  bf16
            row_spec,                          # X_i tile            [TB, D]  bf16
            const((D, H)),                     # W1 user half (folded, bf16)
            const((D, H)),                     # W1 item half (folded, bf16)
            const((1, H)),                     # b1 (folded, f32)
            const((H, H)),                     # W2 (folded, bf16)
            const((1, H)),                     # b2 (folded, f32)
            const((1, H)),                     # w3 as a row (f32)
            pl.BlockSpec(memory_space=pltpu.MemorySpace.SMEM),   # b3 scalar
        ],
        out_specs=pl.BlockSpec((TB, 1), lambda i: (i, 0)),
        compiler_params=pltpu.CompilerParams(
            dimension_semantics=("parallel",),
            vmem_limit_bytes=32 * 1024 * 1024),
    )(X_u, X_i, w1u, w1i, b1, w2, b2, w3_row, b3)
    return out[:B]


# ---------------------- parameter construction / folding ----------------------

def _xavier_uniform(key, fan_in, fan_out):
    # matches torch.nn.init.xavier_uniform_ (gain=1); returned as (in, out)
    bound = (6.0 / (fan_in + fan_out)) ** 0.5
    return jax.random.uniform(key, (fan_in, fan_out), jnp.float32, -bound, bound)


def _linear_bias(key, fan_in, fan_out):
    # torch.nn.Linear default bias init: U(-1/sqrt(fan_in), 1/sqrt(fan_in))
    bound = 1.0 / (fan_in ** 0.5)
    return jax.random.uniform(key, (1, fan_out), jnp.float32, -bound, bound)


def _folded_bn(num_features, eps=1e-5):
    # freshly-initialized BatchNorm1d in eval mode: gamma=1, beta=0, mean=0, var=1
    scale = jnp.full((1, num_features), 1.0 / jnp.sqrt(1.0 + eps), jnp.float32)
    bias = jnp.zeros((1, num_features), jnp.float32)
    return scale, bias


def make_raw_params(key, emb_dim, mlp_size):
    in0 = 2 * emb_dim
    k = jax.random.split(key, 6)
    bn0s, bn0b = _folded_bn(in0)
    w1 = _xavier_uniform(k[0], in0, mlp_size)
    b1 = _linear_bias(k[1], in0, mlp_size)
    bn1s, bn1b = _folded_bn(mlp_size)
    w2 = _xavier_uniform(k[2], mlp_size, mlp_size)
    b2 = _linear_bias(k[3], mlp_size, mlp_size)
    bn2s, bn2b = _folded_bn(mlp_size)
    w3 = _xavier_uniform(k[4], mlp_size, 1)
    b3 = _linear_bias(k[5], mlp_size, 1)
    return (bn0s, bn0b, w1, b1, bn1s, bn1b, w2, b2, bn2s, bn2b, w3, b3)


def fold_params(raw, emb_dim):
    """Fold the eval-mode BatchNorms into the Linears and split W1 (no concat)."""
    (bn0s, bn0b, w1, b1, bn1s, bn1b, w2, b2, bn2s, bn2b, w3, b3) = raw
    w1f = (w1 * bn0s.T) * bn1s                        # [2D, H]
    b1f = (bn0b @ w1 + b1) * bn1s + bn1b              # [1, H]
    w2f = w2 * bn2s                                   # [H, H]
    b2f = b2 * bn2s + bn2b                            # [1, H]
    return (w1f[:emb_dim].astype(jnp.bfloat16),       # W1 user half
            w1f[emb_dim:].astype(jnp.bfloat16),       # W1 item half
            b1f,
            w2f.astype(jnp.bfloat16),
            b2f,
            w3.T,                                     # [1, H] row for VPU reduce
            b3.reshape(1))                            # SMEM scalar


# ------------------------------- references ----------------------------------

def reference_unfused(ids, X, raw):
    """Original module math (eval mode), f32 everywhere."""
    (bn0s, bn0b, w1, b1, bn1s, bn1b, w2, b2, bn2s, bn2b, w3, b3) = raw
    X_u = X[ids[:, 0], 0, :]
    X_i = X[ids[:, 1], 0, :]
    h = jnp.concatenate([X_u, X_i], axis=-1)
    h = h * bn0s + bn0b
    h = h @ w1 + b1
    h = h * bn1s + bn1b
    h = jnp.where(h > 0, h, 0.01 * h)
    h = h @ w2 + b2
    h = h * bn2s + bn2b
    h = jnp.where(h > 0, h, 0.01 * h)
    return h @ w3 + b3


def reference_folded(ids, X, folded):
    """Same folded/bf16-quantized math as the kernel, in plain JAX (f32 accum)."""
    w1u, w1i, b1, w2, b2, w3_row, b3 = folded
    f32 = jnp.float32
    X_u = X[ids[:, 0], 0, :].astype(jnp.bfloat16).astype(f32)
    X_i = X[ids[:, 1], 0, :].astype(jnp.bfloat16).astype(f32)
    h = X_u @ w1u.astype(f32) + X_i @ w1i.astype(f32) + b1
    h = jnp.where(h > 0, h, 0.01 * h)
    h = h.astype(jnp.bfloat16).astype(f32) @ w2.astype(f32) + b2
    h = jnp.where(h > 0, h, 0.01 * h)
    return jnp.sum(h * w3_row, axis=-1, keepdims=True) + b3[0]


if __name__ == "__main__":
    key = jax.random.PRNGKey(0)
    k_emb, k_ids, k_par = jax.random.split(key, 3)

    num_entities = 10
    emb_dim = 16          # D  -> MLP input is 2D = 32
    mlp_size = 64         # module default
    batch = 8

    # embs: shape (N, 1, D) so that X[ids][:, 0, :] matches the PyTorch indexing
    X = jax.random.normal(k_emb, (num_entities, 1, emb_dim), jnp.float32)
    ids = jax.random.randint(k_ids, (batch, 2), 0, num_entities, jnp.int32)
    raw = make_raw_params(k_par, emb_dim, mlp_size)
    folded = fold_params(raw, emb_dim)

    out = sinmlp_forward(ids, X, folded)
    out = jax.block_until_ready(out)
    assert out.shape == (batch, 1)

    # tight check vs. the folded/bf16 math the kernel implements
    ref_f = reference_folded(ids, X, folded)
    assert jnp.allclose(out, ref_f, atol=1e-3, rtol=1e-3), "mismatch vs folded reference"

    # loose check vs. the original unfused f32 module math (bf16 quantization noise)
    ref_u = reference_unfused(ids, X, raw)
    assert jnp.allclose(out, ref_u, atol=5e-2, rtol=5e-2), "mismatch vs original reference"

    print("KERNEL_OK")
</pallas_src>

<mosaic_0001>
module attributes {stable_mosaic.version = 11 : i64} {
  func.func @sinmlp_kernel(%arg0: i32, %arg1: memref<8x16xbf16, #tpu.memory_space<vmem>>, %arg2: memref<8x16xbf16, #tpu.memory_space<vmem>>, %arg3: memref<16x64xbf16, #tpu.memory_space<vmem>>, %arg4: memref<16x64xbf16, #tpu.memory_space<vmem>>, %arg5: memref<1x64xf32, #tpu.memory_space<vmem>>, %arg6: memref<64x64xbf16, #tpu.memory_space<vmem>>, %arg7: memref<1x64xf32, #tpu.memory_space<vmem>>, %arg8: memref<1x64xf32, #tpu.memory_space<vmem>>, %arg9: memref<1xf32, #tpu.memory_space<smem>>, %arg10: memref<8x1xf32, #tpu.memory_space<vmem>>) attributes {dimension_semantics = [#tpu.dimension_semantics<parallel>], iteration_bounds = array<i64: 1>, scalar_prefetch = 0 : i64, scratch_operands = 0 : i64, tpu.core_type = #tpu.core_type<tc>, window_params = [{transform_indices = @transform_0, window_bounds = array<i64: 8, 16>}, {transform_indices = @transform_1, window_bounds = array<i64: 8, 16>}, {pipeline_mode = #tpu.pipeline_mode<synchronous>, transform_indices = @transform_2, window_bounds = array<i64: 16, 64>}, {pipeline_mode = #tpu.pipeline_mode<synchronous>, transform_indices = @transform_3, window_bounds = array<i64: 16, 64>}, {pipeline_mode = #tpu.pipeline_mode<synchronous>, transform_indices = @transform_4, window_bounds = array<i64: 1, 64>}, {pipeline_mode = #tpu.pipeline_mode<synchronous>, transform_indices = @transform_5, window_bounds = array<i64: 64, 64>}, {pipeline_mode = #tpu.pipeline_mode<synchronous>, transform_indices = @transform_6, window_bounds = array<i64: 1, 64>}, {pipeline_mode = #tpu.pipeline_mode<synchronous>, transform_indices = @transform_7, window_bounds = array<i64: 1, 64>}, {transform_indices = @transform_8, window_bounds = array<i64: 1>}, {transform_indices = @transform_9, window_bounds = array<i64: 8, 1>}]} {
    %c0 = arith.constant 0 : index
    %c0_0 = arith.constant 0 : index
    %0 = vector.load %arg1[%c0, %c0_0] : memref<8x16xbf16, #tpu.memory_space<vmem>>, vector<8x16xbf16>
    %c0_1 = arith.constant 0 : index
    %c0_2 = arith.constant 0 : index
    %1 = vector.load %arg3[%c0_1, %c0_2] : memref<16x64xbf16, #tpu.memory_space<vmem>>, vector<16x64xbf16>
    %cst = arith.constant dense<0.000000e+00> : vector<8x64xf32>
    %2 = tpu.matmul %0, %1, %cst {dimension_numbers = #tpu.dot_dimension_numbers<[1], [0], [0], [1], [0, 0, 1, 1], [], []>} : vector<8x16xbf16>, vector<16x64xbf16>, vector<8x64xf32> -> vector<8x64xf32>
    %c0_3 = arith.constant 0 : index
    %c0_4 = arith.constant 0 : index
    %3 = vector.load %arg2[%c0_3, %c0_4] : memref<8x16xbf16, #tpu.memory_space<vmem>>, vector<8x16xbf16>
    %c0_5 = arith.constant 0 : index
    %c0_6 = arith.constant 0 : index
    %4 = vector.load %arg4[%c0_5, %c0_6] : memref<16x64xbf16, #tpu.memory_space<vmem>>, vector<16x64xbf16>
    %cst_7 = arith.constant dense<0.000000e+00> : vector<8x64xf32>
    %5 = tpu.matmul %3, %4, %cst_7 {dimension_numbers = #tpu.dot_dimension_numbers<[1], [0], [0], [1], [0, 0, 1, 1], [], []>} : vector<8x16xbf16>, vector<16x64xbf16>, vector<8x64xf32> -> vector<8x64xf32>
    %6 = arith.addf %2, %5 : vector<8x64xf32>
    %c0_8 = arith.constant 0 : index
    %c0_9 = arith.constant 0 : index
    %7 = vector.load %arg5[%c0_8, %c0_9] : memref<1x64xf32, #tpu.memory_space<vmem>>, vector<1x64xf32>
    %8 = vector.broadcast %7 : vector<1x64xf32> to vector<8x64xf32>
    %9 = arith.addf %6, %8 : vector<8x64xf32>
    %cst_10 = arith.constant 0.000000e+00 : f32
    %10 = vector.broadcast %cst_10 : f32 to vector<8x64xf32>
    %11 = arith.cmpf ogt, %9, %10 : vector<8x64xf32>
    %cst_11 = arith.constant 0.00999999977 : f32
    %12 = vector.broadcast %cst_11 : f32 to vector<8x64xf32>
    %13 = arith.mulf %12, %9 : vector<8x64xf32>
    %14 = arith.select %11, %9, %13 : vector<8x64xi1>, vector<8x64xf32>
    %15 = arith.truncf %14 : vector<8x64xf32> to vector<8x64xbf16>
    %c0_12 = arith.constant 0 : index
    %c0_13 = arith.constant 0 : index
    %16 = vector.load %arg6[%c0_12, %c0_13] : memref<64x64xbf16, #tpu.memory_space<vmem>>, vector<64x64xbf16>
    %cst_14 = arith.constant dense<0.000000e+00> : vector<8x64xf32>
    %17 = tpu.matmul %15, %16, %cst_14 {dimension_numbers = #tpu.dot_dimension_numbers<[1], [0], [0], [1], [0, 0, 1, 1], [], []>} : vector<8x64xbf16>, vector<64x64xbf16>, vector<8x64xf32> -> vector<8x64xf32>
    %c0_15 = arith.constant 0 : index
    %c0_16 = arith.constant 0 : index
    %18 = vector.load %arg7[%c0_15, %c0_16] : memref<1x64xf32, #tpu.memory_space<vmem>>, vector<1x64xf32>
    %19 = vector.broadcast %18 : vector<1x64xf32> to vector<8x64xf32>
    %20 = arith.addf %17, %19 : vector<8x64xf32>
    %cst_17 = arith.constant 0.000000e+00 : f32
    %21 = vector.broadcast %cst_17 : f32 to vector<8x64xf32>
    %22 = arith.cmpf ogt, %20, %21 : vector<8x64xf32>
    %cst_18 = arith.constant 0.00999999977 : f32
    %23 = vector.broadcast %cst_18 : f32 to vector<8x64xf32>
    %24 = arith.mulf %23, %20 : vector<8x64xf32>
    %25 = arith.select %22, %20, %24 : vector<8x64xi1>, vector<8x64xf32>
    %c0_19 = arith.constant 0 : index
    %c0_20 = arith.constant 0 : index
    %26 = vector.load %arg8[%c0_19, %c0_20] : memref<1x64xf32, #tpu.memory_space<vmem>>, vector<1x64xf32>
    %27 = vector.broadcast %26 : vector<1x64xf32> to vector<8x64xf32>
    %28 = arith.mulf %25, %27 : vector<8x64xf32>
    %cst_21 = arith.constant dense<0.000000e+00> : vector<8xf32>
    %29 = vector.multi_reduction <add>, %28, %cst_21 [1] : vector<8x64xf32> to vector<8xf32>
    %30 = vector.shape_cast %29 : vector<8xf32> to vector<8x1xf32>
    %c0_22 = arith.constant 0 : index
    %31 = memref.load %arg9[%c0_22] : memref<1xf32, #tpu.memory_space<smem>>
    %32 = vector.broadcast %31 : f32 to vector<8x1xf32>
    %33 = arith.addf %30, %32 : vector<8x1xf32>
    %c0_23 = arith.constant 0 : index
    %c0_24 = arith.constant 0 : index
    %34 = vector.load %arg10[%c0_23, %c0_24] : memref<8x1xf32, #tpu.memory_space<vmem>>, vector<8x1xf32>
    tpu.vector_store %arg10[%c0_23, %c0_24], %33 {strides = array<i32>} : memref<8x1xf32, #tpu.memory_space<vmem>>, vector<8x1xf32>,
    return
  }
  func.func @transform_0(%arg0: i32) -> (i32, i32) {
    %c0_i32 = arith.constant 0 : i32
    %c0_i32_0 = arith.constant 0 : i32
    return %arg0, %c0_i32 : i32, i32
  }
  func.func @transform_1(%arg0: i32) -> (i32, i32) {
    %c0_i32 = arith.constant 0 : i32
    %c0_i32_0 = arith.constant 0 : i32
    return %arg0, %c0_i32 : i32, i32
  }
  func.func @transform_2(%arg0: i32) -> (i32, i32) {
    %c0_i32 = arith.constant 0 : i32
    %c0_i32_0 = arith.constant 0 : i32
    %c0_i32_1 = arith.constant 0 : i32
    return %c0_i32, %c0_i32_0 : i32, i32
  }
  func.func @transform_3(%arg0: i32) -> (i32, i32) {
    %c0_i32 = arith.constant 0 : i32
    %c0_i32_0 = arith.constant 0 : i32
    %c0_i32_1 = arith.constant 0 : i32
    return %c0_i32, %c0_i32_0 : i32, i32
  }
  func.func @transform_4(%arg0: i32) -> (i32, i32) {
    %c0_i32 = arith.constant 0 : i32
    %c0_i32_0 = arith.constant 0 : i32
    %c0_i32_1 = arith.constant 0 : i32
    return %c0_i32, %c0_i32_0 : i32, i32
  }
  func.func @transform_5(%arg0: i32) -> (i32, i32) {
    %c0_i32 = arith.constant 0 : i32
    %c0_i32_0 = arith.constant 0 : i32
    %c0_i32_1 = arith.constant 0 : i32
    return %c0_i32, %c0_i32_0 : i32, i32
  }
  func.func @transform_6(%arg0: i32) -> (i32, i32) {
    %c0_i32 = arith.constant 0 : i32
    %c0_i32_0 = arith.constant 0 : i32
    %c0_i32_1 = arith.constant 0 : i32
    return %c0_i32, %c0_i32_0 : i32, i32
  }
  func.func @transform_7(%arg0: i32) -> (i32, i32) {
    %c0_i32 = arith.constant 0 : i32
    %c0_i32_0 = arith.constant 0 : i32
    %c0_i32_1 = arith.constant 0 : i32
    return %c0_i32, %c0_i32_0 : i32, i32
  }
  func.func @transform_8(%arg0: i32) -> i32 {
    %c0_i32 = arith.constant 0 : i32
    %c0_i32_0 = arith.constant 0 : i32
    return %c0_i32 : i32
  }
  func.func @transform_9(%arg0: i32) -> (i32, i32) {
    %c0_i32 = arith.constant 0 : i32
    %c0_i32_0 = arith.constant 0 : i32
    return %arg0, %c0_i32 : i32, i32
  }
}

</mosaic_0001>

<bundles_post_ra>
// kernel: tpu_custom_call.1
= control target key start
LH: loop header
LB: loop body
LE: loop exit
PB: predicated region body
PF: predicated region fallthrough
CT: control target
= control target key end

     0   :  { %15 = vsyncpa [#allocation4], 0  ;;  %s588_s0 = inlined_call_operand.hbm [shape: bf16[8,16], index: 0, kind: input, shape index: {}]   ;;  %s589_s1 = inlined_call_operand.hbm [shape: bf16[8,16], index: 1, kind: input, shape index: {}]   ;;  %s590_s2 = inlined_call_operand.hbm [shape: bf16[16,64], index: 2, kind: input, shape index: {}]   ;;  %s591_s3 = inlined_call_operand.hbm [shape: bf16[16,64], index: 3, kind: input, shape index: {}]   ;;  %s592_s4 = inlined_call_operand.vmem [shape: f32[1,64], index: 4, kind: input, shape index: {}]   ;;  %s593_s5 = inlined_call_operand.hbm [shape: bf16[64,64], index: 5, kind: input, shape index: {}]   ;;  %s594_s6 = inlined_call_operand.vmem [shape: f32[1,64], index: 6, kind: input, shape index: {}]   ;;  %s595_s7 = inlined_call_operand.vmem [shape: f32[1,64], index: 7, kind: input, shape index: {}]   ;;  %s596_s8 = inlined_call_operand.<no memory space> [shape: f32[1], index: 8, kind: input, shape index: {}]   ;;  %s597_s9 = inlined_call_operand.vmem [shape: f32[8,1], index: 9, kind: output, shape index: {}]  }
   0x1   :  { %16 = vsyncpa [#allocation6], 0 }
   0x2   :  { %17 = vsyncpa [#allocation9], 0  ;;  %s490_s30 = smov [#allocation5]  }
   0x3   :  { %s34_s10 = sshll.u32 %s490_s30, 4  ;;  %s35_s10 = int_to_ptr.vmem [resolvable:$true] %s34_s10 }
   0x4   :  { %s392_s11 = scalar_lea.vmem %s35_s10, 64  ;;  %p397_p1 = scmp.lt.s32.totalorder %s35_s10, %s35_s10 }
   0x5   :  { %p393_p0 = scmp.ne.s32.totalorder %s35_s10, %s392_s11  ;;  %p398_p2 = scmp.lt.s32.totalorder %s392_s11, %s392_s11 }
   0x7   :  { %p399_p3 = por %p398_p2, %p397_p1 }
   0x9   :  { %p400_p4 = pnand %p399_p3, %p393_p0 }
   0xb   :  { %403 = shalt.err (!%p400_p4)
}
   0xc   :  { %37 = dma.hbm_to_vmem [thread:$0]  %s589_s1, 64, %s35_s10, [#allocation6]  }
   0xd   :  { %s491_s14 = smov [#allocation8]   ;;  %s492_s16 = smov [#allocation3]  }
   0xe   :  { %s55_s15 = sshll.u32 %s491_s14, 4  ;;  %s24_s17 = sshll.u32 %s492_s16, 4  ;;  %s56_s15 = int_to_ptr.vmem [resolvable:$true] %s55_s15  ;;  %s25_s17 = int_to_ptr.vmem [resolvable:$true] %s24_s17 }
   0xf   :  { %s412_s18 = scalar_lea.vmem %s56_s15, 128  ;;  %p417_p6 = scmp.lt.s32.totalorder %s56_s15, %s56_s15 }
  0x10   :  { %p413_p5 = scmp.ne.s32.totalorder %s56_s15, %s412_s18  ;;  %p418_p7 = scmp.lt.s32.totalorder %s412_s18, %s412_s18 }
  0x12   :  { %p419_p8 = por %p418_p7, %p417_p6 }
  0x14   :  { %p420_p9 = pnand %p419_p8, %p413_p5 }
  0x16   :  { %423 = shalt.err (!%p420_p9)
}
  0x17   :  { %s493_s19 = smov 64   ;;  %s494_s20 = smov 4  }
  0x18   :  { %61 = dma.hbm_to_vmem [thread:$0]  %s591_s3, 128, %s56_s15, [#allocation9], %s493_s19, %s493_s19, %s494_s20  }
  0x19   :  { %s432_s1 = scalar_lea.vmem %s25_s17, 64  ;;  %p437_p11 = scmp.lt.s32.totalorder %s25_s17, %s25_s17 }
  0x1a   :  { %p433_p10 = scmp.ne.s32.totalorder %s25_s17, %s432_s1  ;;  %p438_p12 = scmp.lt.s32.totalorder %s432_s1, %s432_s1 }
  0x1c   :  { %p439_p13 = por %p438_p12, %p437_p11 }
  0x1e   :  { %p440_p0 = pnand %p439_p13, %p433_p10 }
  0x20   :  { %443 = shalt.err (!%p440_p0)
}
  0x21   :  { %27 = dma.hbm_to_vmem [thread:$0]  %s588_s0, 64, %s25_s17, [#allocation4]  }
  0x22   :  { %s495_s25 = smov [#allocation7]   ;;  %s496_s27 = smov [#allocation10]  }
  0x23   :  { %s43_s26 = sshll.u32 %s495_s25, 4  ;;  %s69_s28 = sshll.u32 %s496_s27, 4  ;;  %s44_s26 = int_to_ptr.vmem [resolvable:$true] %s43_s26  ;;  %s70_s28 = int_to_ptr.vmem [resolvable:$true] %s69_s28 }
  0x24   :  { %s452_s29 = scalar_lea.vmem %s44_s26, 128  ;;  %p457_p2 = scmp.lt.s32.totalorder %s44_s26, %s44_s26 }
  0x25   :  { %p453_p1 = scmp.ne.s32.totalorder %s44_s26, %s452_s29  ;;  %p458_p3 = scmp.lt.s32.totalorder %s452_s29, %s452_s29 }
  0x27   :  { %p459_p4 = por %p458_p3, %p457_p2 }
  0x29   :  { %p460_p5 = pnand %p459_p4, %p453_p1 }
  0x2b   :  { %463 = shalt.err (!%p460_p5)
}
  0x2c   :  { %49 = dma.hbm_to_vmem [thread:$0]  %s590_s2, 128, %s44_s26, [#allocation6], %s493_s19, %s493_s19, %s494_s20  }
  0x2d   :  { %s472_s0 = scalar_lea.vmem %s70_s28, 512  ;;  %p477_p7 = scmp.lt.s32.totalorder %s70_s28, %s70_s28 }
  0x2e   :  { %p473_p6 = scmp.ne.s32.totalorder %s70_s28, %s472_s0  ;;  %p478_p8 = scmp.lt.s32.totalorder %s472_s0, %s472_s0 }
  0x30   :  { %p479_p9 = por %p478_p8, %p477_p7 }
  0x32   :  { %p480_p10 = pnand %p479_p9, %p473_p6 }
  0x34   :  { %483 = shalt.err (!%p480_p10)
}
  0x35   :  { %75 = dma.hbm_to_vmem [thread:$0]  %s593_s5, 512, %s70_s28, [#allocation9], %s493_s19, %s493_s19, %s494_s20  }
  0x36   :  { %484 = dma.done.wait [#allocation4], 64  }
  0x37   :  { %485 = vsyncadd [#allocation4], 4294967232 }
  0x38   :  { %486 = dma.done.wait [#allocation6], 192  }
  0x39   :  { %487 = vsyncadd [#allocation6], 4294967104 }
  0x3a   :  { %488 = dma.done.wait [#allocation9], 640  }
  0x3b   :  { %489 = vsyncadd [#allocation9], 4294966656  ;;  %v497_v0 = vmov 0.0   ;;  %vm498_vm0 = vmmov 0   ;;  %v378_v1 = vld [vmem:[#allocation8] sm:$0xff]   ;;  %vm110_vm1 = vcmask 130048   ;;  %v313_v34 = vstv %s596_s8 }
  0x3c   :  { %345 = vmatprep.subr.bf16.mxu1 %v497_v0  ;;  %347 = vmatprep.mubr.msk.bf16.mxu1 %vm498_vm0, %v497_v0  ;;  %v101_v2 = vld [vmem:[#allocation5] sm:$0xf]  ;;  %v379_v3 = vld [vmem:[#allocation7] sm:$0xff]   ;;  %v98_v4 = vld [vmem:[#allocation3] sm:$0xf]  ;;  %vm254_vm3 = vcmask 523264  }
  0x3d   :  { %357 = vmatprep.subr.bf16.mxu0 %v497_v0  ;;  %365 = vmatprep.mubr.msk.bf16.mxu0 %vm498_vm0, %v497_v0  ;;  %v380_v5 = vld [vmem:[#allocation10 + $0x18] sm:$0xff]   ;;  %v381_v6 = vld [vmem:[#allocation10 + $0x10] sm:$0xff]   ;;  %v382_v7 = vld [vmem:[#allocation10 + $0x8] sm:$0xff]   ;;  %vm315_vm5 = vcmask 7168  }
  0x3e   :  { %346 = vmatpush3.bf16.msra.mxu1 %v378_v1  ;;  %358 = vmatpush3.bf16.msra.mxu0 %v380_v5  ;;  %v383_v8 = vld [vmem:[#allocation10] sm:$0xff]   ;;  %v328_v14 = vld [vmem:[%s592_s4] ss:$0 sm:$0xff] }
  0x3f   :  { %351 = vmatprep.subr.bf16.mxu1 %v497_v0  ;;  %359 = vmatprep.subr.bf16.mxu0 %v497_v0  ;;  %v329_v23 = vld [vmem:[%s594_s6] ss:$0 sm:$0xff] }
  0x40   :  { %v335_v28 = vld [vmem:[%s595_s7] ss:$0 sm:$0xff] }
  0x41   :  { %348 = vmatmul.mubr.msk.bf16.vlgmr.msra.gmra.mxu1 %vm110_vm1, %v101_v2 }
  0x42   :  { %352 = vmatpush3.bf16.msra.mxu1 %v379_v3  ;;  %353 = vmatprep.mubr.msk.bf16.mxu1 %vm498_vm0, %v497_v0 }
  0x43   :  { %360 = vmatpush3.bf16.msra.mxu0 %v381_v6 }
  0x44   :  { %361 = vmatprep.subr.bf16.mxu0 %v497_v0 }
  0x47   :  { %362 = vmatpush3.bf16.msra.mxu0 %v382_v7 }
  0x48   :  { %363 = vmatprep.subr.bf16.mxu0 %v497_v0 }
  0x49   :  { %354 = vmatmul.mubr.msk.bf16.vlgmr.msra.gmra.mxu1 %vm110_vm1, %v98_v4 }
  0x4b   :  { %364 = vmatpush3.bf16.msra.mxu0 %v383_v8 }
 0x101   :  { %v148_v9 = vpop.f32.mrf.mxu1 }
 0x103   :  { %v349_v10 = vpop.f32.mrf.mxu1 }
 0x105   :  { %v151_v11 = vpop.f32.mrf.mxu1 }
 0x107   :  { %v350_v12 = vpop.f32.mrf.mxu1 }
 0x109   :  { %v197_v13 = vpop.f32.mrf.mxu1 }
 0x10a   :  { %v198_v15 = vadd.f32 %v197_v13, %v148_v9 }
 0x10b   :  { %v355_v16 = vpop.f32.mrf.mxu1 }
 0x10c   :  { %v210_v17 = vadd.f32 %v328_v14, %v198_v15 }
 0x10d   :  { %v200_v18 = vpop.f32.mrf.mxu1 }
 0x10e   :  { %vm211_vm2 = vcmp.gt.f32.partialorder %v210_v17, 0.0  ;;  %v212_v19 = vmul.f32 0.01, %v210_v17 }
 0x10f   :  { %v356_v20 = vpop.f32.mrf.mxu1 }
 0x110   :  { %v213_v21 = vsel %vm211_vm2, %v210_v17, %v212_v19 }
 0x111   :  { %v214_v22 = vpack.c.bf16 %v213_v21, %v213_v21 }
 0x113   :  { %366 = vmatmul.mubr.msk.bf16.vlgmr.msra.gmra.mxu0 %vm254_vm3, %v214_v22 }
 0x1d3   :  { %v292_v24 = vpop.f32.mrf.mxu0 }
 0x1d4   :  { %v293_v25 = vadd.f32 %v329_v23, %v292_v24 }
 0x1d5   :  { %v367_v26 = vpop.f32.mrf.mxu0 }
 0x1d6   :  { %v299_v27 = vmul.f32 0.01, %v293_v25  ;;  %vm298_vm4 = vcmp.gt.f32.partialorder %v293_v25, 0.0 }
 0x1d7   :  { %v295_v29 = vpop.f32.mrf.mxu0 }
 0x1d8   :  { %v300_v30 = vsel %vm298_vm4, %v293_v25, %v299_v27 }
 0x1d9   :  { %v368_v31 = vpop.f32.mrf.mxu0  ;;  %v308_v32 = vmul.f32 %v335_v28, %v300_v30 }
 0x1db   :  { %v309_v33 = vsel %vm254_vm3, %v308_v32, 0.0 }
 0x1dc   :  { %310 = vadd.xlane.f32.xlu0 %v309_v33 }
 0x265   :  { %v311_v35 = vpop.xlane.xlu0 %310 }
 0x266   :  { %v314_v36 = vadd.f32 %v313_v34, %v311_v35 }
 0x268   :  { %316 = vst.msk [vmem:[%s597_s9] sm:$0xff] %vm315_vm5, %v314_v36 }
 0x269   :  { %321 = vsyncpa [#allocation4], 1 }
 0x26a   :  { %322 = vsyncpa [#allocation6], 1 }
 0x26b   :  { %323 = vsyncpa [#allocation9], 1 }

</bundles_post_ra>
